<compile_context>
chip_gen: v7x
topology: tpu7x:2x2x1
jax: 0.10.0
libtpu: 0.0.40
codegen_flags: <defaults>
</compile_context>

<pallas_src>
import numpy as np
import jax
import jax.numpy as jnp
from jax import lax
from jax.experimental import pallas as pl
from jax.experimental.pallas import tpu as pltpu

N_BINS = 15
LANES = 128
MAX_TILE_ROWS = 16384          # absolute row-tile cap (8-16K when VMEM allows)


def _round_up(x, m):
    return ((x + m - 1) // m) * m


def _vmem_capacity_bytes():
    """Physical VMEM per TensorCore (128 MiB v5e/v6e, 64 MiB v7x); safe fallback."""
    try:
        info = pltpu.get_tpu_info()
        cap = int(getattr(info, "vmem_capacity_bytes", 0) or 0)
        if cap > 0:
            return cap
    except Exception:
        pass
    return 64 * 1024 * 1024


def _num_tensorcores():
    """TensorCores a single 'parallel' grid axis can shard over (2 on megacore chips)."""
    try:
        dev = jax.devices()[0]
    except Exception:
        return 1
    nc = getattr(dev, "num_cores", None)
    if isinstance(nc, int) and nc > 0:
        return max(1, min(2, nc))
    kind = str(getattr(dev, "device_kind", "")).lower()
    if any(tag in kind for tag in ("v4", "v5p", "v7", "7x")):
        return 2
    return 1


def _choose_tile_n(n_rows, n_classes, in_bytes, b_pad, budget):
    """Largest row tile (multiple of 128) whose lane-padded VMEM footprint fits budget."""
    c_pad = _round_up(max(n_classes, 1), LANES)     # (tile_n, C) arrays pad lanes to 128
    per_row = (
        2 * c_pad * in_bytes        # double-buffered logits block
        + 2 * c_pad * 4             # f32 exp argument + exp(x - m)
        + 4 * LANES * 4             # (tile_n, 1) columns (m, denom, conf, pred), lane-padded
        + 2 * LANES * 4             # relayout slab + its transpose
        + 2 * 4                     # double-buffered lane-dense labels
        + 3 * b_pad * 4             # in_bin / product temporaries
        + 4 * 4                     # lane-dense conf / pred / correct / row-mask rows
    )
    tile = budget // per_row
    tile = max(LANES, min(MAX_TILE_ROWS, (int(tile) // LANES) * LANES))
    tile = min(tile, _round_up(n_rows, LANES))      # don't over-allocate for small N
    return int(tile)


def _make_ece_kernel(n_rows, tile_n, tiles_per_core):
    def kernel(logits_ref, labels_ref, lo_ref, hi_ref, cnt_ref, csum_ref, asum_ref):
        p = pl.program_id(0)   # core / row-shard index ("parallel")
        t = pl.program_id(1)   # row-tile index within the shard ("arbitrary")

        @pl.when(t == 0)
        def _init():
            cnt_ref[...] = jnp.zeros_like(cnt_ref)
            csum_ref[...] = jnp.zeros_like(csum_ref)
            asum_ref[...] = jnp.zeros_like(asum_ref)

        x = logits_ref[...]                                   # (tile_n, C), native dtype
        n_cls = x.shape[1]

        # Row max + first-index argmax in the native dtype (exact; bf16 runs at the
        # packed VALU rate on v6e/v7x and avoids a full-width f32 copy for these passes).
        m = jnp.max(x, axis=1, keepdims=True)                 # (tile_n, 1)
        cls = lax.broadcasted_iota(jnp.int32, x.shape, 1)
        pred_col = jnp.min(jnp.where(x == m, cls, n_cls),
                           axis=1, keepdims=True)             # torch.max tie-break

        # Upcast only for the exp argument; max softmax prob == exp(0)/denom == 1/denom.
        e = jnp.exp(x.astype(jnp.float32) - m.astype(jnp.float32))
        denom = jnp.sum(e, axis=1, keepdims=True)             # (tile_n, 1)
        conf_col = 1.0 / denom

        # Relayout the two per-row columns to lane-dense rows with ONE aligned
        # (tile_n, 128) -> (128, tile_n) XLU transpose (bit-exact, no MXU rounding).
        lane = lax.broadcasted_iota(jnp.int32, (tile_n, LANES), 1)
        slab = jnp.where(lane == 0, conf_col, 0.0)
        slab = jnp.where(lane == 1, pred_col.astype(jnp.float32), slab)
        slab_t = jnp.transpose(slab, (1, 0))                  # (128, tile_n)
        conf = slab_t[0:1, :]                                 # (1, tile_n)
        pred = slab_t[1:2, :]                                 # (1, tile_n)

        labels = labels_ref[...].astype(jnp.float32)          # (1, tile_n)
        correct = (pred == labels).astype(jnp.float32)

        # Mask rows past N (ragged last tile / clamped duplicate tile): push their
        # confidence outside every bin (also kills any garbage/NaN padded rows).
        row = lax.broadcasted_iota(jnp.int32, (1, tile_n), 1)
        global_row = (p * tiles_per_core + t) * tile_n + row
        conf = jnp.where(global_row < n_rows, conf, -1.0)

        # Bins on sublanes, rows on lanes: (b_pad, tile_n) membership, lane-reduced
        # in-kernel so the resident accumulators are (b_pad, 1) per core and the
        # per-step read-modify-write stream is independent of tile_n.
        in_bin = ((conf > lo_ref[...]) & (conf <= hi_ref[...])).astype(jnp.float32)
        cnt_ref[0] += jnp.sum(in_bin, axis=1, keepdims=True)
        csum_ref[0] += jnp.sum(in_bin * conf, axis=1, keepdims=True)
        asum_ref[0] += jnp.sum(in_bin * correct, axis=1, keepdims=True)

    return kernel


def ece_loss_pallas(logits, labels, n_bins=N_BINS, *, max_tile_rows=None, force_cores=None):
    """Expected Calibration Error (is_prob=False path of _ECELoss.forward)."""
    n, c = logits.shape
    b_pad = max(8, _round_up(n_bins, 8))

    vmem_phys = _vmem_capacity_bytes()
    vmem_limit = max(32 * 1024 * 1024, min(vmem_phys * 3 // 4, 100 * 1024 * 1024))
    data_budget = max(8 * 1024 * 1024, min(vmem_phys // 2, 64 * 1024 * 1024))

    tile_n = _choose_tile_n(n, c, logits.dtype.itemsize, b_pad, data_budget)
    if max_tile_rows is not None:                      # test hook / manual override
        tile_n = min(tile_n, max(LANES, _round_up(int(max_tile_rows), LANES)))
    num_tiles = int(pl.cdiv(n, tile_n))

    ncores_hw = int(force_cores) if force_cores is not None else _num_tensorcores()
    ncores = ncores_hw if num_tiles >= ncores_hw else 1
    tiles_per_core = int(pl.cdiv(num_tiles, ncores))

    labels2 = labels.reshape(1, n).astype(jnp.int32)   # lane-dense labels

    # torch.linspace(0, 1, n_bins + 1) boundaries, padded so unused bins
    # (lo=2, hi=3) can never contain a confidence in (0, 1].
    boundaries = np.linspace(0.0, 1.0, n_bins + 1).astype(np.float32)
    lowers = np.full((b_pad, 1), 2.0, np.float32)
    uppers = np.full((b_pad, 1), 3.0, np.float32)
    lowers[:n_bins, 0] = boundaries[:-1]
    uppers[:n_bins, 0] = boundaries[1:]

    def row_block(pidx, tidx):
        # Clamp so a shard with fewer real tiles never issues an OOB block; the
        # clamped duplicate's contributions are killed by the in-kernel row mask.
        return jnp.minimum(pidx * tiles_per_core + tidx, num_tiles - 1)

    acc_spec = pl.BlockSpec((1, b_pad, 1), lambda pidx, tidx: (pidx, 0, 0))
    acc_shape = jax.ShapeDtypeStruct((ncores, b_pad, 1), jnp.float32)

    kernel = _make_ece_kernel(n, tile_n, tiles_per_core)

    cnt, csum, asum = pl.pallas_call(
        kernel,
        out_shape=(acc_shape, acc_shape, acc_shape),
        grid=(ncores, tiles_per_core),
        in_specs=[
            pl.BlockSpec((tile_n, c), lambda pidx, tidx: (row_block(pidx, tidx), 0)),
            pl.BlockSpec((1, tile_n), lambda pidx, tidx: (0, row_block(pidx, tidx))),
            pl.BlockSpec((b_pad, 1), lambda pidx, tidx: (0, 0)),
            pl.BlockSpec((b_pad, 1), lambda pidx, tidx: (0, 0)),
        ],
        out_specs=(acc_spec, acc_spec, acc_spec),
        compiler_params=pltpu.CompilerParams(
            dimension_semantics=("parallel", "arbitrary"),
            vmem_limit_bytes=int(vmem_limit),
        ),
    )(logits, labels2, jnp.asarray(lowers), jnp.asarray(uppers))

    # Tiny epilogue in plain JAX: combine per-core partial statistics.
    cnt_b = jnp.sum(cnt, axis=(0, 2))[:n_bins]
    conf_b = jnp.sum(csum, axis=(0, 2))[:n_bins]
    acc_b = jnp.sum(asum, axis=(0, 2))[:n_bins]
    nonempty = cnt_b > 0.0
    safe = jnp.where(nonempty, cnt_b, 1.0)
    prop = cnt_b / float(n)
    ece = jnp.sum(jnp.where(nonempty,
                            jnp.abs(conf_b / safe - acc_b / safe) * prop,
                            0.0))
    return ece.reshape(1)   # matches the torch.zeros(1)-shaped return


def ece_loss_ref(logits, labels, n_bins=N_BINS):
    """Pure-JAX reference mirroring the PyTorch forward (is_prob=False)."""
    softmaxes = jax.nn.softmax(logits.astype(jnp.float32), axis=1)
    confidences = jnp.max(softmaxes, axis=1)
    predictions = jnp.argmax(softmaxes, axis=1)
    accuracies = (predictions == labels).astype(jnp.float32)
    boundaries = np.linspace(0.0, 1.0, n_bins + 1).astype(np.float32)
    n = confidences.shape[0]
    ece = jnp.zeros((1,), jnp.float32)
    for lo, hi in zip(boundaries[:-1], boundaries[1:]):
        in_bin = (confidences > lo) & (confidences <= hi)
        cnt = jnp.sum(in_bin.astype(jnp.float32))
        prop = cnt / n
        safe = jnp.where(cnt > 0, cnt, 1.0)
        acc_in = jnp.sum(jnp.where(in_bin, accuracies, 0.0)) / safe
        conf_in = jnp.sum(jnp.where(in_bin, confidences, 0.0)) / safe
        ece = ece + jnp.where(cnt > 0, jnp.abs(conf_in - acc_in) * prop, 0.0)
    return ece


if __name__ == "__main__":
    key = jax.random.PRNGKey(0)

    # (n, c, dtype, max_tile_rows, force_cores):
    #   - small ragged single-tile case (primary shape),
    #   - forced multi-tile + 2-shard split exercising the clamp and row mask,
    #   - odd tile count with a masked duplicate tile on the second shard,
    #   - native-bf16 streaming path (max/argmax in bf16, f32 exp).
    cases = [
        (64,   16, jnp.float32, None, None),
        (300,  10, jnp.float32, 128,  2),
        (2560,  8, jnp.float32, 512,  2),
        (1536, 32, jnp.bfloat16, None, None),
    ]
    for n, c, dtype, mtr, fc in cases:
        key, k_logits, k_labels = jax.random.split(key, 3)
        logits = (jax.random.normal(k_logits, (n, c), dtype=jnp.float32) * 2.0).astype(dtype)
        labels = jax.random.randint(k_labels, (n,), 0, c, dtype=jnp.int32)

        ece = ece_loss_pallas(logits, labels, max_tile_rows=mtr, force_cores=fc)
        jax.block_until_ready(ece)

        ece_ref = ece_loss_ref(logits, labels)
        np.testing.assert_allclose(np.asarray(ece), np.asarray(ece_ref),
                                   rtol=1e-4, atol=2e-6)

    print("KERNEL_OK")
</pallas_src>

<mosaic_0001>
module attributes {stable_mosaic.version = 11 : i64} {
  func.func @kernel(%arg0: i32, %arg1: i32, %arg2: memref<128x16xf32, #tpu.memory_space<vmem>>, %arg3: memref<1x128xi32, #tpu.memory_space<vmem>>, %arg4: memref<16x1xf32, #tpu.memory_space<vmem>>, %arg5: memref<16x1xf32, #tpu.memory_space<vmem>>, %arg6: memref<1x16x1xf32, #tpu.memory_space<vmem>>, %arg7: memref<1x16x1xf32, #tpu.memory_space<vmem>>, %arg8: memref<1x16x1xf32, #tpu.memory_space<vmem>>) attributes {dimension_semantics = [#tpu.dimension_semantics<parallel>, #tpu.dimension_semantics<arbitrary>], iteration_bounds = array<i64: 1, 1>, scalar_prefetch = 0 : i64, scratch_operands = 0 : i64, tpu.core_type = #tpu.core_type<tc>, window_params = [{transform_indices = @transform_0, window_bounds = array<i64: 128, 16>}, {transform_indices = @transform_1, window_bounds = array<i64: 1, 128>}, {pipeline_mode = #tpu.pipeline_mode<synchronous>, transform_indices = @transform_2, window_bounds = array<i64: 16, 1>}, {pipeline_mode = #tpu.pipeline_mode<synchronous>, transform_indices = @transform_3, window_bounds = array<i64: 16, 1>}, {transform_indices = @transform_4, window_bounds = array<i64: 1, 16, 1>}, {transform_indices = @transform_5, window_bounds = array<i64: 1, 16, 1>}, {transform_indices = @transform_6, window_bounds = array<i64: 1, 16, 1>}]} {
    %c0_i32 = arith.constant 0 : i32
    %0 = arith.cmpi eq, %arg1, %c0_i32 : i32
    %1 = arith.extui %0 : i1 to i32
    %c0_i32_0 = arith.constant 0 : i32
    %2 = arith.cmpi ne, %1, %c0_i32_0 : i32
    scf.if %2 {
      %cst_36 = arith.constant 0.000000e+00 : f32
      %90 = vector.broadcast %cst_36 : f32 to vector<1x16x1xf32>
      %c0_37 = arith.constant 0 : index
      %c0_38 = arith.constant 0 : index
      %c0_39 = arith.constant 0 : index
      %91 = vector.load %arg6[%c0_37, %c0_38, %c0_39] : memref<1x16x1xf32, #tpu.memory_space<vmem>>, vector<1x16x1xf32>
      tpu.vector_store %arg6[%c0_37, %c0_38, %c0_39], %90 {strides = array<i32>} : memref<1x16x1xf32, #tpu.memory_space<vmem>>, vector<1x16x1xf32>,
      %cst_40 = arith.constant 0.000000e+00 : f32
      %92 = vector.broadcast %cst_40 : f32 to vector<1x16x1xf32>
      %c0_41 = arith.constant 0 : index
      %c0_42 = arith.constant 0 : index
      %c0_43 = arith.constant 0 : index
      %93 = vector.load %arg7[%c0_41, %c0_42, %c0_43] : memref<1x16x1xf32, #tpu.memory_space<vmem>>, vector<1x16x1xf32>
      tpu.vector_store %arg7[%c0_41, %c0_42, %c0_43], %92 {strides = array<i32>} : memref<1x16x1xf32, #tpu.memory_space<vmem>>, vector<1x16x1xf32>,
      %cst_44 = arith.constant 0.000000e+00 : f32
      %94 = vector.broadcast %cst_44 : f32 to vector<1x16x1xf32>
      %c0_45 = arith.constant 0 : index
      %c0_46 = arith.constant 0 : index
      %c0_47 = arith.constant 0 : index
      %95 = vector.load %arg8[%c0_45, %c0_46, %c0_47] : memref<1x16x1xf32, #tpu.memory_space<vmem>>, vector<1x16x1xf32>
      tpu.vector_store %arg8[%c0_45, %c0_46, %c0_47], %94 {strides = array<i32>} : memref<1x16x1xf32, #tpu.memory_space<vmem>>, vector<1x16x1xf32>,
    } else {
    }
    %c0 = arith.constant 0 : index
    %c0_1 = arith.constant 0 : index
    %3 = vector.load %arg2[%c0, %c0_1] : memref<128x16xf32, #tpu.memory_space<vmem>>, vector<128x16xf32>
    %cst = arith.constant dense<0xFF800000> : vector<128xf32>
    %4 = vector.multi_reduction <maximumf>, %3, %cst [1] : vector<128x16xf32> to vector<128xf32>
    %5 = vector.shape_cast %4 : vector<128xf32> to vector<128x1xf32>
    %6 = tpu.iota {dimensions = array<i32: 1>} : vector<128x16xi32>
    %7 = vector.broadcast %5 : vector<128x1xf32> to vector<128x16xf32>
    %8 = arith.cmpf oeq, %3, %7 : vector<128x16xf32>
    %c16_i32 = arith.constant 16 : i32
    %9 = vector.broadcast %c16_i32 : i32 to vector<128x16xi32>
    %10 = arith.select %8, %6, %9 : vector<128x16xi1>, vector<128x16xi32>
    %cst_2 = arith.constant dense<2147483647> : vector<128xi32>
    %11 = vector.multi_reduction <minsi>, %10, %cst_2 [1] : vector<128x16xi32> to vector<128xi32>
    %12 = vector.shape_cast %11 : vector<128xi32> to vector<128x1xi32>
    %13 = vector.broadcast %5 : vector<128x1xf32> to vector<128x16xf32>
    %14 = arith.subf %3, %13 : vector<128x16xf32>
    %15 = math.exp %14 : vector<128x16xf32>
    %cst_3 = arith.constant dense<0.000000e+00> : vector<128xf32>
    %16 = vector.multi_reduction <add>, %15, %cst_3 [1] : vector<128x16xf32> to vector<128xf32>
    %17 = vector.shape_cast %16 : vector<128xf32> to vector<128x1xf32>
    %cst_4 = arith.constant 1.000000e+00 : f32
    %18 = vector.broadcast %cst_4 : f32 to vector<128x1xf32>
    %19 = arith.divf %18, %17 : vector<128x1xf32>
    %20 = tpu.iota {dimensions = array<i32: 1>} : vector<128x128xi32>
    %c0_i32_5 = arith.constant 0 : i32
    %21 = vector.broadcast %c0_i32_5 : i32 to vector<128x128xi32>
    %22 = arith.cmpi eq, %20, %21 : vector<128x128xi32>
    %cst_6 = arith.constant 0.000000e+00 : f32
    %23 = vector.shape_cast %19 : vector<128x1xf32> to vector<128x1xf32>
    %24 = vector.broadcast %23 : vector<128x1xf32> to vector<128x128xf32>
    %25 = vector.broadcast %cst_6 : f32 to vector<128x128xf32>
    %26 = arith.select %22, %24, %25 : vector<128x128xi1>, vector<128x128xf32>
    %c1_i32 = arith.constant 1 : i32
    %27 = vector.broadcast %c1_i32 : i32 to vector<128x128xi32>
    %28 = arith.cmpi eq, %20, %27 : vector<128x128xi32>
    %29 = arith.sitofp %12 : vector<128x1xi32> to vector<128x1xf32>
    %30 = vector.shape_cast %29 : vector<128x1xf32> to vector<128x1xf32>
    %31 = vector.broadcast %30 : vector<128x1xf32> to vector<128x128xf32>
    %32 = arith.select %28, %31, %26 : vector<128x128xi1>, vector<128x128xf32>
    %33 = tpu.transpose %32, [1, 0] : vector<128x128xf32> -> vector<128x128xf32>
    %34 = vector.extract_strided_slice %33 {offsets = [0, 0], sizes = [1, 128], strides = [1, 1]} : vector<128x128xf32> to vector<1x128xf32>
    %35 = vector.extract_strided_slice %33 {offsets = [1, 0], sizes = [1, 128], strides = [1, 1]} : vector<128x128xf32> to vector<1x128xf32>
    %c0_7 = arith.constant 0 : index
    %c0_8 = arith.constant 0 : index
    %36 = vector.load %arg3[%c0_7, %c0_8] : memref<1x128xi32, #tpu.memory_space<vmem>>, vector<1x128xi32>
    %37 = arith.sitofp %36 : vector<1x128xi32> to vector<1x128xf32>
    %38 = arith.cmpf oeq, %35, %37 : vector<1x128xf32>
    %39 = arith.extui %38 : vector<1x128xi1> to vector<1x128xi32>
    %40 = arith.sitofp %39 : vector<1x128xi32> to vector<1x128xf32>
    %41 = tpu.iota {dimensions = array<i32: 1>} : vector<1x128xi32>
    %c1_i32_9 = arith.constant 1 : i32
    %42 = arith.muli %arg0, %c1_i32_9 : i32
    %43 = arith.addi %42, %arg1 : i32
    %c128_i32 = arith.constant 128 : i32
    %44 = arith.muli %43, %c128_i32 : i32
    %45 = vector.broadcast %44 : i32 to vector<1x128xi32>
    %46 = arith.addi %45, %41 : vector<1x128xi32>
    %c64_i32 = arith.constant 64 : i32
    %47 = vector.broadcast %c64_i32 : i32 to vector<1x128xi32>
    %48 = arith.cmpi slt, %46, %47 : vector<1x128xi32>
    %cst_10 = arith.constant -1.000000e+00 : f32
    %49 = vector.broadcast %cst_10 : f32 to vector<1x128xf32>
    %50 = arith.select %48, %34, %49 : vector<1x128xi1>, vector<1x128xf32>
    %c0_11 = arith.constant 0 : index
    %c0_12 = arith.constant 0 : index
    %51 = vector.load %arg4[%c0_11, %c0_12] : memref<16x1xf32, #tpu.memory_space<vmem>>, vector<16x1xf32>
    %52 = vector.broadcast %50 : vector<1x128xf32> to vector<16x128xf32>
    %53 = vector.broadcast %51 : vector<16x1xf32> to vector<16x128xf32>
    %54 = arith.cmpf ogt, %52, %53 : vector<16x128xf32>
    %c0_13 = arith.constant 0 : index
    %c0_14 = arith.constant 0 : index
    %55 = vector.load %arg5[%c0_13, %c0_14] : memref<16x1xf32, #tpu.memory_space<vmem>>, vector<16x1xf32>
    %56 = vector.broadcast %50 : vector<1x128xf32> to vector<16x128xf32>
    %57 = vector.broadcast %55 : vector<16x1xf32> to vector<16x128xf32>
    %58 = arith.cmpf ole, %56, %57 : vector<16x128xf32>
    %59 = arith.andi %54, %58 : vector<16x128xi1>
    %60 = arith.extui %59 : vector<16x128xi1> to vector<16x128xi32>
    %61 = arith.sitofp %60 : vector<16x128xi32> to vector<16x128xf32>
    %c0_15 = arith.constant 0 : index
    %c0_16 = arith.constant 0 : index
    %c0_17 = arith.constant 0 : index
    %62 = vector.load %arg6[%c0_15, %c0_16, %c0_17] : memref<1x16x1xf32, #tpu.memory_space<vmem>>, vector<1x16x1xf32>
    %63 = vector.shape_cast %62 : vector<1x16x1xf32> to vector<16x1xf32>
    %cst_18 = arith.constant dense<0.000000e+00> : vector<16xf32>
    %64 = vector.multi_reduction <add>, %61, %cst_18 [1] : vector<16x128xf32> to vector<16xf32>
    %65 = vector.shape_cast %64 : vector<16xf32> to vector<16x1xf32>
    %66 = arith.addf %63, %65 : vector<16x1xf32>
    %c0_19 = arith.constant 0 : index
    %c0_20 = arith.constant 0 : index
    %c0_21 = arith.constant 0 : index
    %67 = vector.load %arg6[%c0_19, %c0_20, %c0_21] : memref<1x16x1xf32, #tpu.memory_space<vmem>>, vector<1x16x1xf32>
    %68 = vector.shape_cast %67 : vector<1x16x1xf32> to vector<16x1xf32>
    %69 = vector.shape_cast %66 : vector<16x1xf32> to vector<1x16x1xf32>
    tpu.vector_store %arg6[%c0_19, %c0_20, %c0_21], %69 {strides = array<i32>} : memref<1x16x1xf32, #tpu.memory_space<vmem>>, vector<1x16x1xf32>,
    %c0_22 = arith.constant 0 : index
    %c0_23 = arith.constant 0 : index
    %c0_24 = arith.constant 0 : index
    %70 = vector.load %arg7[%c0_22, %c0_23, %c0_24] : memref<1x16x1xf32, #tpu.memory_space<vmem>>, vector<1x16x1xf32>
    %71 = vector.shape_cast %70 : vector<1x16x1xf32> to vector<16x1xf32>
    %72 = vector.broadcast %50 : vector<1x128xf32> to vector<16x128xf32>
    %73 = arith.mulf %61, %72 : vector<16x128xf32>
    %cst_25 = arith.constant dense<0.000000e+00> : vector<16xf32>
    %74 = vector.multi_reduction <add>, %73, %cst_25 [1] : vector<16x128xf32> to vector<16xf32>
    %75 = vector.shape_cast %74 : vector<16xf32> to vector<16x1xf32>
    %76 = arith.addf %71, %75 : vector<16x1xf32>
    %c0_26 = arith.constant 0 : index
    %c0_27 = arith.constant 0 : index
    %c0_28 = arith.constant 0 : index
    %77 = vector.load %arg7[%c0_26, %c0_27, %c0_28] : memref<1x16x1xf32, #tpu.memory_space<vmem>>, vector<1x16x1xf32>
    %78 = vector.shape_cast %77 : vector<1x16x1xf32> to vector<16x1xf32>
    %79 = vector.shape_cast %76 : vector<16x1xf32> to vector<1x16x1xf32>
    tpu.vector_store %arg7[%c0_26, %c0_27, %c0_28], %79 {strides = array<i32>} : memref<1x16x1xf32, #tpu.memory_space<vmem>>, vector<1x16x1xf32>,
    %c0_29 = arith.constant 0 : index
    %c0_30 = arith.constant 0 : index
    %c0_31 = arith.constant 0 : index
    %80 = vector.load %arg8[%c0_29, %c0_30, %c0_31] : memref<1x16x1xf32, #tpu.memory_space<vmem>>, vector<1x16x1xf32>
    %81 = vector.shape_cast %80 : vector<1x16x1xf32> to vector<16x1xf32>
    %82 = vector.broadcast %40 : vector<1x128xf32> to vector<16x128xf32>
    %83 = arith.mulf %61, %82 : vector<16x128xf32>
    %cst_32 = arith.constant dense<0.000000e+00> : vector<16xf32>
    %84 = vector.multi_reduction <add>, %83, %cst_32 [1] : vector<16x128xf32> to vector<16xf32>
    %85 = vector.shape_cast %84 : vector<16xf32> to vector<16x1xf32>
    %86 = arith.addf %81, %85 : vector<16x1xf32>
    %c0_33 = arith.constant 0 : index
    %c0_34 = arith.constant 0 : index
    %c0_35 = arith.constant 0 : index
    %87 = vector.load %arg8[%c0_33, %c0_34, %c0_35] : memref<1x16x1xf32, #tpu.memory_space<vmem>>, vector<1x16x1xf32>
    %88 = vector.shape_cast %87 : vector<1x16x1xf32> to vector<16x1xf32>
    %89 = vector.shape_cast %86 : vector<16x1xf32> to vector<1x16x1xf32>
    tpu.vector_store %arg8[%c0_33, %c0_34, %c0_35], %89 {strides = array<i32>} : memref<1x16x1xf32, #tpu.memory_space<vmem>>, vector<1x16x1xf32>,
    return
  }
  func.func @transform_0(%arg0: i32, %arg1: i32) -> (i32, i32) {
    %c1_i32 = arith.constant 1 : i32
    %0 = arith.muli %arg0, %c1_i32 : i32
    %1 = arith.addi %0, %arg1 : i32
    %c0_i32 = arith.constant 0 : i32
    %2 = arith.minsi %1, %c0_i32 : i32
    %c0_i32_0 = arith.constant 0 : i32
    %c0_i32_1 = arith.constant 0 : i32
    return %2, %c0_i32_0 : i32, i32
  }
  func.func @transform_1(%arg0: i32, %arg1: i32) -> (i32, i32) {
    %c1_i32 = arith.constant 1 : i32
    %0 = arith.muli %arg0, %c1_i32 : i32
    %1 = arith.addi %0, %arg1 : i32
    %c0_i32 = arith.constant 0 : i32
    %2 = arith.minsi %1, %c0_i32 : i32
    %c0_i32_0 = arith.constant 0 : i32
    %c0_i32_1 = arith.constant 0 : i32
    return %c0_i32_0, %2 : i32, i32
  }
  func.func @transform_2(%arg0: i32, %arg1: i32) -> (i32, i32) {
    %c0_i32 = arith.constant 0 : i32
    %c0_i32_0 = arith.constant 0 : i32
    %c0_i32_1 = arith.constant 0 : i32
    return %c0_i32, %c0_i32_0 : i32, i32
  }
  func.func @transform_3(%arg0: i32, %arg1: i32) -> (i32, i32) {
    %c0_i32 = arith.constant 0 : i32
    %c0_i32_0 = arith.constant 0 : i32
    %c0_i32_1 = arith.constant 0 : i32
    return %c0_i32, %c0_i32_0 : i32, i32
  }
  func.func @transform_4(%arg0: i32, %arg1: i32) -> (i32, i32, i32) {
    %c0_i32 = arith.constant 0 : i32
    %c0_i32_0 = arith.constant 0 : i32
    %c0_i32_1 = arith.constant 0 : i32
    return %arg0, %c0_i32, %c0_i32_0 : i32, i32, i32
  }
  func.func @transform_5(%arg0: i32, %arg1: i32) -> (i32, i32, i32) {
    %c0_i32 = arith.constant 0 : i32
    %c0_i32_0 = arith.constant 0 : i32
    %c0_i32_1 = arith.constant 0 : i32
    return %arg0, %c0_i32, %c0_i32_0 : i32, i32, i32
  }
  func.func @transform_6(%arg0: i32, %arg1: i32) -> (i32, i32, i32) {
    %c0_i32 = arith.constant 0 : i32
    %c0_i32_0 = arith.constant 0 : i32
    %c0_i32_1 = arith.constant 0 : i32
    return %arg0, %c0_i32, %c0_i32_0 : i32, i32, i32
  }
}

</mosaic_0001>

<bundles_post_ra>
// kernel: tpu_custom_call.1
= control target key start
LH: loop header
LB: loop body
LE: loop exit
PB: predicated region body
PF: predicated region fallthrough
CT: control target
= control target key end

     0   :  { %vm113_vm0 = vcmask 130048   ;;  %v1476_v32 = vlaneseq  ;;  %s1469_s0 = inlined_call_operand.vmem [shape: f32[64,16], index: 0, kind: input, shape index: {}]   ;;  %s1470_s2 = inlined_call_operand.vmem [shape: f32[16,1], index: 2, kind: input, shape index: {}]   ;;  %s1471_s3 = inlined_call_operand.vmem [shape: f32[16,1], index: 3, kind: input, shape index: {}]   ;;  %s1472_s4 = inlined_call_operand.vmem [shape: f32[1,16,1], index: 4, kind: output, shape index: {0}]   ;;  %s1473_s1 = inlined_call_operand.vmem [shape: s32[1,64], index: 1, kind: input, shape index: {}]   ;;  %s1474_s5 = inlined_call_operand.vmem [shape: f32[1,16,1], index: 5, kind: output, shape index: {1}]   ;;  %s1475_s6 = inlined_call_operand.vmem [shape: f32[1,16,1], index: 6, kind: output, shape index: {2}]  }
   0x1   :  { %v872_v0 = vld [vmem:[%s1469_s0] sm:$0xff]  ;;  %v877_v1 = vld [vmem:[%s1469_s0 + $0x10] sm:$0xff]  ;;  %v882_v2 = vld [vmem:[%s1469_s0 + $0x8] sm:$0xff] }
   0x2   :  { %v114_v3 = vsel %vm113_vm0, %v872_v0, -inf  ;;  %v120_v4 = vsel %vm113_vm0, %v877_v1, -inf  ;;  %v891_v5 = vld [vmem:[%s1469_s0 + $0x18] sm:$0xff]  ;;  %v117_v6 = vsel %vm113_vm0, %v882_v2, -inf  ;;  %v900_v8 = vld [vmem:[%s1469_s0 + $0x20] sm:$0xff]  ;;  %v905_v9 = vld [vmem:[%s1469_s0 + $0x28] sm:$0xff] }
   0x3   :  { %115 = vmax.xlane.f32.xlu0 %v114_v3  ;;  %121 = vmax.xlane.f32.xlu1 %v120_v4  ;;  %v123_v7 = vsel %vm113_vm0, %v891_v5, -inf  ;;  %v126_v10 = vsel %vm113_vm0, %v900_v8, -inf  ;;  %v129_v11 = vsel %vm113_vm0, %v905_v9, -inf  ;;  %v914_v12 = vld [vmem:[%s1469_s0 + $0x30] sm:$0xff]  ;;  %v919_v13 = vld [vmem:[%s1469_s0 + $0x38] sm:$0xff]  ;;  %v928_v16 = vld [vmem:[%s1469_s0 + $0x40] sm:$0xff] }
   0x4   :  { %v132_v14 = vsel %vm113_vm0, %v914_v12, -inf  ;;  %v135_v15 = vsel %vm113_vm0, %v919_v13, -inf  ;;  %v933_v17 = vld [vmem:[%s1469_s0 + $0x48] sm:$0xff]  ;;  %v138_v18 = vsel %vm113_vm0, %v928_v16, -inf  ;;  %v942_v20 = vld [vmem:[%s1469_s0 + $0x50] sm:$0xff]  ;;  %v947_v21 = vld [vmem:[%s1469_s0 + $0x58] sm:$0xff] }
   0x5   :  { %v141_v19 = vsel %vm113_vm0, %v933_v17, -inf  ;;  %v144_v22 = vsel %vm113_vm0, %v942_v20, -inf  ;;  %v147_v23 = vsel %vm113_vm0, %v947_v21, -inf  ;;  %v956_v24 = vld [vmem:[%s1469_s0 + $0x60] sm:$0xff]  ;;  %v961_v25 = vld [vmem:[%s1469_s0 + $0x68] sm:$0xff]  ;;  %v970_v28 = vld [vmem:[%s1469_s0 + $0x70] sm:$0xff] }
   0x6   :  { %v150_v26 = vsel %vm113_vm0, %v956_v24, -inf  ;;  %v153_v27 = vsel %vm113_vm0, %v961_v25, -inf  ;;  %v975_v29 = vld [vmem:[%s1469_s0 + $0x78] sm:$0xff]  ;;  %v156_v30 = vsel %vm113_vm0, %v970_v28, -inf  ;;  %v982_v33 = vand.u32 127, %v1476_v32 }
   0x7   :  { %118 = vmax.xlane.f32.xlu0 %v117_v6  ;;  %124 = vmax.xlane.f32.xlu1 %v123_v7  ;;  %v159_v31 = vsel %vm113_vm0, %v975_v29, -inf }
   0x8   :  { %1480 = vst [vmem:[#allocation2_spill] sm:$0xff] %v982_v33 }
   0xb   :  { %127 = vmax.xlane.f32.xlu0 %v126_v10  ;;  %130 = vmax.xlane.f32.xlu1 %v129_v11 }
   0xf   :  { %133 = vmax.xlane.f32.xlu0 %v132_v14  ;;  %136 = vmax.xlane.f32.xlu1 %v135_v15 }
  0x13   :  { %139 = vmax.xlane.f32.xlu0 %v138_v18  ;;  %142 = vmax.xlane.f32.xlu1 %v141_v19 }
  0x17   :  { %145 = vmax.xlane.f32.xlu0 %v144_v22  ;;  %148 = vmax.xlane.f32.xlu1 %v147_v23 }
  0x1b   :  { %151 = vmax.xlane.f32.xlu0 %v150_v26  ;;  %154 = vmax.xlane.f32.xlu1 %v153_v27 }
  0x1f   :  { %157 = vmax.xlane.f32.xlu0 %v156_v30  ;;  %160 = vmax.xlane.f32.xlu1 %v159_v31 }
  0x90   :  { %v984_v34 = vpop.xlane.xlu0 %115  ;;  %v986_v35 = vpop.xlane.xlu1 %121 }
  0x91   :  { %vm164_vm1 = vcmp.eq.f32.partialorder %v872_v0, %v984_v34  ;;  %vm166_vm2 = vcmp.eq.f32.partialorder %v877_v1, %v986_v35  ;;  %v436_v18 = vsub.f32 %v872_v0, %v984_v34 }
  0x92   :  { %v180_v36 = vsel %vm164_vm1, %v982_v33, 16  ;;  %v182_v37 = vsel %vm166_vm2, %v982_v33, 16 }
  0x93   :  { %v995_v38 = vsel %vm113_vm0, %v180_v36, 2147483647  ;;  %v1003_v42 = vsel %vm113_vm0, %v182_v37, 2147483647  ;;  %v452_v36 = vmul.f32 1.442695, %v436_v18  ;;  %v438_v37 = vsub.f32 %v877_v1, %v986_v35 }
  0x94   :  { %v997_v39 = vpop.xlane.xlu0 %118  ;;  %v999_v40 = vpop.xlane.xlu1 %124  ;;  %v198_v41 = vshra.s32 %v995_v38, 16  ;;  %v228_v46 = vshra.s32 %v1003_v42, 16 }
  0x95   :  { %vm165_vm3 = vcmp.eq.f32.partialorder %v882_v2, %v997_v39  ;;  %vm167_vm4 = vcmp.eq.f32.partialorder %v891_v5, %v999_v40  ;;  %768 = vpow2.f32 %v452_v36 }
  0x96   :  { %v181_v43 = vsel %vm165_vm3, %v982_v33, 16  ;;  %v183_v44 = vsel %vm167_vm4, %v982_v33, 16  ;;  %v1011_v45 = vcvt.s32.f32 %v198_v41  ;;  %v1032_v54 = vcvt.s32.f32 %v228_v46 }
  0x97   :  { %v1015_v47 = vsel %vm113_vm0, %v181_v43, 2147483647  ;;  %v1023_v51 = vsel %vm113_vm0, %v183_v44, 2147483647  ;;  %v437_v44 = vsub.f32 %v882_v2, %v997_v39  ;;  %v456_v39 = vmul.f32 1.442695, %v438_v37 }
  0x98   :  { %v1017_v48 = vpop.xlane.xlu0 %127  ;;  %v1019_v49 = vpop.xlane.xlu1 %130  ;;  %v213_v50 = vshra.s32 %v1015_v47, 16  ;;  %201 = vmin.xlane.f32.xlu0 %v1011_v45  ;;  %v243_v56 = vshra.s32 %v1023_v51, 16 }
  0x99   :  { %vm168_vm5 = vcmp.eq.f32.partialorder %v900_v8, %v1017_v48  ;;  %vm169_vm6 = vcmp.eq.f32.partialorder %v905_v9, %v1019_v49  ;;  %770 = vpow2.f32 %v456_v39 }
  0x9a   :  { %v184_v52 = vsel %vm168_vm5, %v982_v33, 16  ;;  %v185_v53 = vsel %vm169_vm6, %v982_v33, 16  ;;  %v1034_v55 = vcvt.s32.f32 %v213_v50  ;;  %v1055_v63 = vcvt.s32.f32 %v243_v56 }
  0x9b   :  { %v1042_v59 = vsel %vm113_vm0, %v184_v52, 2147483647  ;;  %v1045_v60 = vsel %vm113_vm0, %v185_v53, 2147483647 }
  0x9c   :  { %v1037_v57 = vpop.xlane.xlu0 %133  ;;  %v1039_v58 = vpop.xlane.xlu1 %136  ;;  %231 = vmin.xlane.f32.xlu0 %v1032_v54  ;;  %216 = vmin.xlane.f32.xlu1 %v1034_v55  ;;  %v258_v3 = vshra.s32 %v1042_v59, 16  ;;  %v273_v4 = vshra.s32 %v1045_v60, 16 }
  0x9d   :  { %vm170_vm7 = vcmp.eq.f32.partialorder %v914_v12, %v1037_v57  ;;  %vm171_vm8 = vcmp.eq.f32.partialorder %v919_v13, %v1039_v58 }
  0x9e   :  { %v186_v61 = vsel %vm170_vm7, %v982_v33, 16  ;;  %v187_v62 = vsel %vm171_vm8, %v982_v33, 16  ;;  %v1067_v11 = vcvt.s32.f32 %v258_v3  ;;  %v1080_v19 = vcvt.s32.f32 %v273_v4 }
  0x9f   :  { %v1064_v10 = vsel %vm113_vm0, %v186_v61, 2147483647  ;;  %v1072_v14 = vsel %vm113_vm0, %v187_v62, 2147483647  ;;  %v454_v62 = vmul.f32 1.442695, %v437_v44  ;;  %v439_v3 = vsub.f32 %v891_v5, %v999_v40 }
  0xa0   :  { %v1059_v6 = vpop.xlane.xlu0 %139  ;;  %v1061_v7 = vpop.xlane.xlu1 %142  ;;  %246 = vmin.xlane.f32.xlu1 %v1055_v63  ;;  %261 = vmin.xlane.f32.xlu0 %v1067_v11  ;;  %v288_v22 = vshra.s32 %v1064_v10, 16  ;;  %v303_v27 = vshra.s32 %v1072_v14, 16 }
  0xa1   :  { %vm172_vm9 = vcmp.eq.f32.partialorder %v928_v16, %v1059_v6  ;;  %vm173_vm10 = vcmp.eq.f32.partialorder %v933_v17, %v1061_v7  ;;  %772 = vpow2.f32 %v454_v62 }
  0xa2   :  { %v188_v15 = vsel %vm172_vm9, %v982_v33, 16  ;;  %v189_v31 = vsel %vm173_vm10, %v982_v33, 16  ;;  %v1093_v0 = vcvt.s32.f32 %v288_v22  ;;  %v1103_v41 = vcvt.s32.f32 %v303_v27 }
  0xa3   :  { %v1089_v30 = vsel %vm113_vm0, %v188_v15, 2147483647  ;;  %v1113_v52 = vsel %vm113_vm0, %v189_v31, 2147483647 }
  0xa4   :  { %v1083_v23 = vpop.xlane.xlu0 %145  ;;  %v1085_v26 = vpop.xlane.xlu1 %148  ;;  %276 = vmin.xlane.f32.xlu1 %v1080_v19  ;;  %291 = vmin.xlane.f32.xlu0 %v1093_v0  ;;  %v318_v43 = vshra.s32 %v1089_v30, 16  ;;  %v333_v56 = vshra.s32 %v1113_v52, 16 }
  0xa5   :  { %vm174_vm11 = vcmp.eq.f32.partialorder %v942_v20, %v1083_v23  ;;  %vm175_vm12 = vcmp.eq.f32.partialorder %v947_v21, %v1085_v26 }
  0xa6   :  { %v190_v34 = vsel %vm174_vm11, %v982_v33, 16  ;;  %v191_v1 = vsel %vm175_vm12, %v982_v33, 16  ;;  %v1120_v35 = vcvt.s32.f32 %v318_v43  ;;  %v1143_v31 = vcvt.s32.f32 %v333_v56 }
  0xa7   :  { %v1116_v53 = vsel %vm113_vm0, %v190_v34, 2147483647  ;;  %v1137_v18 = vsel %vm113_vm0, %v191_v1, 2147483647  ;;  %v458_v43 = vmul.f32 1.442695, %v439_v3 }
  0xa8   :  { %v1108_v46 = vpop.xlane.xlu0 %151  ;;  %v1110_v50 = vpop.xlane.xlu1 %154  ;;  %306 = vmin.xlane.f32.xlu1 %v1103_v41  ;;  %321 = vmin.xlane.f32.xlu0 %v1120_v35  ;;  %v348_v61 = vshra.s32 %v1116_v53, 16  ;;  %v363_v36 = vshra.s32 %v1137_v18, 16 }
  0xa9   :  { %vm176_vm13 = vcmp.eq.f32.partialorder %v956_v24, %v1108_v46  ;;  %vm177_vm14 = vcmp.eq.f32.partialorder %v961_v25, %v1110_v50  ;;  %774 = vpow2.f32 %v458_v43 }
  0xaa   :  { %v192_v2 = vsel %vm176_vm13, %v982_v33, 16  ;;  %v193_v27 = vsel %vm177_vm14, %v982_v33, 16  ;;  %v1145_v34 = vcvt.s32.f32 %v348_v61  ;;  %v1165_v39 = vcvt.s32.f32 %v363_v36 }
  0xab   :  { %v1140_v22 = vsel %vm113_vm0, %v192_v2, 2147483647  ;;  %v1158_v44 = vsel %vm113_vm0, %v193_v27, 2147483647  ;;  %v440_v2 = vsub.f32 %v900_v8, %v1017_v48  ;;  %v769_v48 = vpop.eup %768  ;;  %v441_v36 = vsub.f32 %v905_v9, %v1019_v49 }
  0xac   :  { %v1132_v4 = vpop.xlane.xlu0 %157  ;;  %v1134_v15 = vpop.xlane.xlu1 %160  ;;  %336 = vmin.xlane.f32.xlu1 %v1143_v31  ;;  %351 = vmin.xlane.f32.xlu0 %v1145_v34  ;;  %v378_v37 = vshra.s32 %v1140_v22, 16  ;;  %v393_v61 = vshra.s32 %v1158_v44, 16  ;;  %v443_v49 = vsub.f32 %v919_v13, %v1039_v58  ;;  %v445_v13 = vsub.f32 %v933_v17, %v1061_v7 }
  0xad   :  { %vm178_vm15 = vcmp.eq.f32.partialorder %v970_v28, %v1132_v4  ;;  %vm179_vm1 = vcmp.eq.f32.partialorder %v975_v29, %v1134_v15 }
  0xae   :  { %v194_v5 = vsel %vm178_vm15, %v982_v33, 16  ;;  %v195_v40 = vsel %vm179_vm1, %v982_v33, 16  ;;  %v1167_v56 = vcvt.s32.f32 %v378_v37  ;;  %v1176_v3 = vcvt.s32.f32 %v393_v61  ;;  %v771_v37 = vpop.eup %770 }
  0xaf   :  { %v1161_v1 = vsel %vm113_vm0, %v194_v5, 2147483647  ;;  %v1172_v62 = vsel %vm113_vm0, %v195_v40, 2147483647  ;;  %v460_v5 = vmul.f32 1.442695, %v440_v2  ;;  %v442_v33 = vsub.f32 %v914_v12, %v1037_v57 }
  0xb0   :  { %v408_v32 = vshra.s32 %v1161_v1, 16  ;;  %1481 = vst [vmem:[#allocation3_spill] sm:$0xff] %v1172_v62  ;;  %366 = vmin.xlane.f32.xlu1 %v1165_v39  ;;  %381 = vmin.xlane.f32.xlu0 %v1167_v56  ;;  %v423_v27 = vshra.s32 %v1172_v62, 16  ;;  %v462_v61 = vmul.f32 1.442695, %v441_v36  ;;  %v484_v62 = vsel %vm113_vm0, %v769_v48, 0.0 }
  0xb1   :  { %776 = vpow2.f32 %v460_v5  ;;  %v464_v9 = vmul.f32 1.442695, %v442_v33  ;;  %v490_v2 = vsel %vm113_vm0, %v771_v37, 0.0  ;;  %v466_v12 = vmul.f32 1.442695, %v443_v49 }
  0xb2   :  { %v1179_v8 = vcvt.s32.f32 %v408_v32  ;;  %v1185_v40 = vcvt.s32.f32 %v423_v27  ;;  %v773_v32 = vpop.eup %772  ;;  %778 = vpow2.f32 %v462_v61  ;;  %v444_v57 = vsub.f32 %v928_v16, %v1059_v6 }
  0xb3   :  { %v487_v43 = vsel %vm113_vm0, %v773_v32, 0.0  ;;  %v775_v27 = vpop.eup %774  ;;  %780 = vpow2.f32 %v464_v9  ;;  %v470_v36 = vmul.f32 1.442695, %v445_v13  ;;  %v446_v37 = vsub.f32 %v942_v20, %v1083_v23 }
  0xb4   :  { %396 = vmin.xlane.f32.xlu1 %v1176_v3  ;;  %411 = vmin.xlane.f32.xlu0 %v1179_v8  ;;  %v493_v48 = vsel %vm113_vm0, %v775_v27, 0.0  ;;  %782 = vpow2.f32 %v466_v12  ;;  %v468_v33 = vmul.f32 1.442695, %v444_v57  ;;  %v447_v32 = vsub.f32 %v947_v21, %v1085_v26 }
  0xb5   :  { %v472_v61 = vmul.f32 1.442695, %v446_v37  ;;  %v448_v49 = vsub.f32 %v956_v24, %v1108_v46  ;;  %v450_v27 = vsub.f32 %v970_v28, %v1132_v4 }
  0xb6   :  { %784 = vpow2.f32 %v468_v33  ;;  %v474_v9 = vmul.f32 1.442695, %v447_v32  ;;  %v212_v32 = vand.u32 65535, %v1015_v47 }
  0xb7   :  { %786 = vpow2.f32 %v470_v36  ;;  %v480_v57 = vmul.f32 1.442695, %v450_v27  ;;  %v832_v36 = vmov 0   ;;  %v272_v27 = vand.u32 65535, %v1045_v60 }
  0xb8   :  { %426 = vmin.xlane.f32.xlu1 %v1185_v40  ;;  %485 = vadd.xlane.f32.xlu0 %v484_v62  ;;  %788 = vpow2.f32 %v472_v61 }
  0xb9   :  { %790 = vpow2.f32 %v474_v9  ;;  %767 = vset.pattern.permute.xlu1 %v832_v36  ;;  %766 = vset.pattern.permute.xlu0 %v832_v36 }
  0xbb   :  { %v777_v62 = vpop.eup %776 }
  0xbc   :  { %488 = vadd.xlane.f32.xlu1 %v487_v43  ;;  %491 = vadd.xlane.f32.xlu0 %v490_v2  ;;  %v496_v58 = vsel %vm113_vm0, %v777_v62, 0.0  ;;  %v779_v5 = vpop.eup %778  ;;  %v476_v43 = vmul.f32 1.442695, %v448_v49  ;;  %v449_v2 = vsub.f32 %v961_v25, %v1110_v50  ;;  %v214_v49 = vcvt.s32.f32 %v212_v32  ;;  %v1482_v32 = vld [vmem:[#allocation3_spill] sm:$0xff] }
  0xbd   :  { %v499_v16 = vsel %vm113_vm0, %v779_v5, 0.0  ;;  %v781_v6 = vpop.eup %780 }
  0xbe   :  { %v502_v17 = vsel %vm113_vm0, %v781_v6, 0.0  ;;  %v783_v7 = vpop.eup %782  ;;  %792 = vpow2.f32 %v476_v43  ;;  %v478_v12 = vmul.f32 1.442695, %v449_v2 }
  0xbf   :  { %v505_v20 = vsel %vm113_vm0, %v783_v7, 0.0 }
  0xc0   :  { %494 = vadd.xlane.f32.xlu0 %v493_v48  ;;  %v785_v23 = vpop.eup %784  ;;  %v451_v48 = vsub.f32 %v975_v29, %v1134_v15  ;;  %794 = vpow2.f32 %v478_v12 }
  0xc1   :  { %v508_v21 = vsel %vm113_vm0, %v785_v23, 0.0  ;;  %v787_v26 = vpop.eup %786  ;;  %796 = vpow2.f32 %v480_v57  ;;  %v242_v23 = vand.u32 65535, %v1023_v51 }
  0xc2   :  { %v511_v24 = vsel %vm113_vm0, %v787_v26, 0.0  ;;  %v789_v46 = vpop.eup %788  ;;  %v482_v62 = vmul.f32 1.442695, %v451_v48  ;;  %v302_v48 = vand.u32 65535, %v1072_v14 }
  0xc3   :  { %v514_v25 = vsel %vm113_vm0, %v789_v46, 0.0  ;;  %v791_v50 = vpop.eup %790 }
  0xc4   :  { %497 = vadd.xlane.f32.xlu0 %v496_v58  ;;  %v517_v28 = vsel %vm113_vm0, %v791_v50, 0.0  ;;  %798 = vpow2.f32 %v482_v62  ;;  %v317_v62 = vand.u32 65535, %v1089_v30 }
  0xc8   :  { %500 = vadd.xlane.f32.xlu0 %v499_v16  ;;  %v793_v4 = vpop.eup %792  ;;  %v197_v16 = vand.u32 65535, %v995_v38 }
  0xc9   :  { %v520_v33 = vsel %vm113_vm0, %v793_v4, 0.0 }
  0xca   :  { %v795_v13 = vpop.eup %794  ;;  %v199_v61 = vcvt.s32.f32 %v197_v16 }
  0xcb   :  { %v797_v58 = vpop.eup %796  ;;  %v523_v29 = vsel %vm113_vm0, %v795_v13, 0.0 }
  0xcc   :  { %503 = vadd.xlane.f32.xlu0 %v502_v17  ;;  %v526_v15 = vsel %vm113_vm0, %v797_v58, 0.0  ;;  %v347_v58 = vand.u32 65535, %v1116_v53 }
  0xce   :  { %v799_v5 = vpop.eup %798 }
  0xcf   :  { %v529_v37 = vsel %vm113_vm0, %v799_v5, 0.0 }
  0xd0   :  { %506 = vadd.xlane.f32.xlu0 %v505_v20  ;;  %v227_v20 = vand.u32 65535, %v1003_v42  ;;  %v244_v42 = vcvt.s32.f32 %v242_v23 }
  0xd4   :  { %509 = vadd.xlane.f32.xlu0 %v508_v21 }
  0xd8   :  { %512 = vadd.xlane.f32.xlu0 %v511_v24 }
  0xdc   :  { %515 = vadd.xlane.f32.xlu0 %v514_v25 }
  0xe0   :  { %518 = vadd.xlane.f32.xlu0 %v517_v28 }
  0xe4   :  { %521 = vadd.xlane.f32.xlu0 %v520_v33  ;;  %v319_v33 = vcvt.s32.f32 %v317_v62 }
  0xe8   :  { %524 = vadd.xlane.f32.xlu0 %v523_v29 }
  0xec   :  { %527 = vadd.xlane.f32.xlu0 %v526_v15  ;;  %v362_v15 = vand.u32 65535, %v1137_v18 }
  0xee   :  { %v364_v5 = vcvt.s32.f32 %v362_v15 }
  0xf0   :  { %530 = vadd.xlane.f32.xlu0 %v529_v37  ;;  %v392_v37 = vand.u32 65535, %v1158_v44  ;;  %v682_v44 = vld [vmem:[%s1471_s3 + $0x8] sm:$0xff] }
  0xf2   :  { %v394_v18 = vcvt.s32.f32 %v392_v37 }
 0x125   :  { %v1225_v6 = vpop.xlane.xlu0 %201 }
 0x126   :  { %vm203_vm2 = vcmp.eq.f32.partialorder %v1011_v45, %v1225_v6  ;;  %v229_v45 = vcvt.s32.f32 %v227_v20 }
 0x127   :  { %v204_v17 = vsel %vm203_vm2, %v199_v61, inf }
 0x128   :  { %205 = vmin.xlane.f32.xlu1 %v204_v17  ;;  %v422_v17 = vand.u32 65535, %v1482_v32 }
 0x129   :  { %v1230_v7 = vpop.xlane.xlu1 %216  ;;  %v1232_v9 = vpop.xlane.xlu0 %231 }
 0x12a   :  { %vm218_vm0 = vcmp.eq.f32.partialorder %v1034_v55, %v1230_v7  ;;  %vm233_vm3 = vcmp.eq.f32.partialorder %v1032_v54, %v1232_v9  ;;  %v257_v55 = vand.u32 65535, %v1042_v59  ;;  %v274_v59 = vcvt.s32.f32 %v272_v27 }
 0x12b   :  { %v219_v38 = vsel %vm218_vm0, %v214_v49, inf  ;;  %v234_v2 = vsel %vm233_vm3, %v229_v45, inf  ;;  %v424_v49 = vcvt.s32.f32 %v422_v17  ;;  %v238_v62 = vcvt.f32.s32 %v1232_v9 }
 0x12c   :  { %220 = vmin.xlane.f32.xlu1 %v219_v38  ;;  %v259_v51 = vcvt.s32.f32 %v257_v55  ;;  %vm90_vm3 = vcmask 7168  }
 0x12d   :  { %v1239_v47 = vpop.xlane.xlu1 %246  ;;  %v1242_v43 = vpop.xlane.xlu0 %261 }
 0x12e   :  { %vm248_vm4 = vcmp.eq.f32.partialorder %v1055_v63, %v1239_v47  ;;  %vm263_vm5 = vcmp.eq.f32.partialorder %v1067_v11, %v1242_v43  ;;  %v287_v63 = vand.u32 65535, %v1064_v10  ;;  %v304_v10 = vcvt.s32.f32 %v302_v48 }
 0x12f   :  { %v249_v26 = vsel %vm248_vm4, %v244_v42, inf  ;;  %v264_v24 = vsel %vm263_vm5, %v259_v51, inf }
 0x130   :  { %235 = vmin.xlane.f32.xlu1 %v234_v2  ;;  %v289_v60 = vcvt.s32.f32 %v287_v63 }
 0x131   :  { %v1247_v21 = vpop.xlane.xlu0 %291  ;;  %v1251_v54 = vpop.xlane.xlu1 %276 }
 0x132   :  { %vm278_vm6 = vcmp.eq.f32.partialorder %v1080_v19, %v1251_v54  ;;  %vm293_vm7 = vcmp.eq.f32.partialorder %v1093_v0, %v1247_v21  ;;  %v407_v19 = vand.u32 65535, %v1161_v1 }
 0x133   :  { %v279_v57 = vsel %vm278_vm6, %v274_v59, inf  ;;  %v294_v50 = vsel %vm293_vm7, %v289_v60, inf }
 0x134   :  { %250 = vmin.xlane.f32.xlu1 %v249_v26  ;;  %v409_v4 = vcvt.s32.f32 %v407_v19 }
 0x135   :  { %v1254_v12 = vpop.xlane.xlu0 %321  ;;  %v1263_v11 = vpop.xlane.xlu1 %306 }
 0x136   :  { %vm308_vm8 = vcmp.eq.f32.partialorder %v1103_v41, %v1263_v11  ;;  %vm323_vm10 = vcmp.eq.f32.partialorder %v1120_v35, %v1254_v12  ;;  %v332_v41 = vand.u32 65535, %v1113_v52 }
 0x137   :  { %v309_v0 = vsel %vm308_vm8, %v304_v10, inf  ;;  %v324_v13 = vsel %vm323_vm10, %v319_v33, inf }
 0x138   :  { %265 = vmin.xlane.f32.xlu1 %v264_v24  ;;  %v334_v30 = vcvt.s32.f32 %v332_v41  ;;  %v208_v24 = vcvt.f32.s32 %v1225_v6  ;;  %v1483_v41 = vld [vmem:[#allocation2_spill] sm:$0xff] }
 0x139   :  { %v1259_v46 = vpop.xlane.xlu0 %351  ;;  %v1278_v14 = vpop.xlane.xlu1 %336  ;;  %vm564_vm2 = vcmp.eq.s32.totalorder %v1483_v41, 0  ;;  %vm581_vm0 = vcmp.eq.s32.totalorder %v1483_v41, 1  ;;  %vm661_vm4 = vcmp.lt.s32.totalorder %v1483_v41, 64 }
 0x13a   :  { %vm338_vm11 = vcmp.eq.f32.partialorder %v1143_v31, %v1278_v14  ;;  %vm353_vm12 = vcmp.eq.f32.partialorder %v1145_v34, %v1259_v46  ;;  %v377_v31 = vand.u32 65535, %v1140_v22  ;;  %v664_v22 = vld [vmem:[%s1470_s2 + $0x8] sm:$0xff] }
 0x13b   :  { %v339_v29 = vsel %vm338_vm11, %v334_v30, inf  ;;  %v253_v30 = vcvt.f32.s32 %v1239_v47 }
 0x13c   :  { %280 = vmin.xlane.f32.xlu1 %v279_v57  ;;  %v379_v34 = vcvt.s32.f32 %v377_v31  ;;  %v209_v57 = vshll.u32 %v208_v24, 16 }
 0x13d   :  { %v1266_v25 = vpop.xlane.xlu0 %381  ;;  %v1286_v35 = vpop.xlane.xlu1 %366  ;;  %v254_v31 = vshll.u32 %v253_v30, 16 }
 0x13e   :  { %vm368_vm13 = vcmp.eq.f32.partialorder %v1165_v39, %v1286_v35  ;;  %vm383_vm14 = vcmp.eq.f32.partialorder %v1167_v56, %v1266_v25  ;;  %v681_v56 = vld [vmem:[%s1471_s3] sm:$0xff] }
 0x13f   :  { %v369_v36 = vsel %vm368_vm13, %v364_v5, inf  ;;  %v384_v16 = vsel %vm383_vm14, %v379_v34, inf }
 0x140   :  { %295 = vmin.xlane.f32.xlu1 %v294_v50 }
 0x141   :  { %v1272_v28 = vpop.xlane.xlu0 %411  ;;  %v1294_v53 = vpop.xlane.xlu1 %396 }
 0x142   :  { %vm413_vm9 = vcmp.eq.f32.partialorder %v1179_v8, %v1272_v28  ;;  %v349_v8 = vcvt.s32.f32 %v347_v58  ;;  %vm398_vm15 = vcmp.eq.f32.partialorder %v1176_v3, %v1294_v53  ;;  %v663_v3 = vld [vmem:[%s1470_s2] sm:$0xff] }
 0x143   :  { %v414_v1 = vsel %vm413_vm9, %v409_v4, inf  ;;  %v399_v39 = vsel %vm398_vm15, %v394_v18, inf }
 0x144   :  { %310 = vmin.xlane.f32.xlu1 %v309_v0  ;;  %415 = vmin.xlane.f32.xlu0 %v414_v1  ;;  %v354_v52 = vsel %vm353_vm12, %v349_v8, inf }
 0x145   :  { %v1311_v61 = vpop.xlane.xlu1 %426  ;;  %v486_v38 = vpop.xlane.xlu0 %485 }
 0x146   :  { %vm428_vm1 = vcmp.eq.f32.partialorder %v1185_v40, %v1311_v61  ;;  %800 = vrcp.f32 %v486_v38  ;;  %v223_v40 = vcvt.f32.s32 %v1230_v7  ;;  %v239_v7 = vshll.u32 %v238_v62, 16 }
 0x147   :  { %v429_v20 = vsel %vm428_vm1, %v424_v49, inf }
 0x148   :  { %325 = vmin.xlane.f32.xlu1 %v324_v13  ;;  %v224_v10 = vshll.u32 %v223_v40, 16  ;;  %v313_v40 = vcvt.f32.s32 %v1263_v11 }
 0x149   :  { %v492_v45 = vpop.xlane.xlu0 %491  ;;  %v489_v42 = vpop.xlane.xlu1 %488 }
 0x14a   :  { %802 = vrcp.f32 %v489_v42  ;;  %v298_v42 = vcvt.f32.s32 %v1247_v21 }
 0x14b   :  { %804 = vrcp.f32 %v492_v45 }
 0x14c   :  { %340 = vmin.xlane.f32.xlu1 %v339_v29 }
 0x14d   :  { %v495_v23 = vpop.xlane.xlu0 %494 }
 0x14e   :  { %806 = vrcp.f32 %v495_v23 }
 0x150   :  { %355 = vmin.xlane.f32.xlu1 %v354_v52  ;;  %v801_v4 = vpop.eup %800 }
 0x151   :  { %v498_v2 = vpop.xlane.xlu0 %497  ;;  %v565_v29 = vsel %vm564_vm2, %v801_v4, 0.0  ;;  %v314_v4 = vshll.u32 %v313_v40, 16 }
 0x152   :  { %808 = vrcp.f32 %v498_v2 }
 0x154   :  { %370 = vmin.xlane.f32.xlu1 %v369_v36  ;;  %v803_v9 = vpop.eup %802  ;;  %v268_v36 = vcvt.f32.s32 %v1242_v43 }
 0x155   :  { %v501_v26 = vpop.xlane.xlu0 %500  ;;  %v566_v47 = vsel %vm564_vm2, %v803_v9, 0.0 }
 0x156   :  { %810 = vrcp.f32 %v501_v26 }
 0x158   :  { %385 = vmin.xlane.f32.xlu1 %v384_v16  ;;  %v805_v16 = vpop.eup %804 }
 0x159   :  { %v504_v27 = vpop.xlane.xlu0 %503  ;;  %v567_v43 = vsel %vm564_vm2, %v805_v16, 0.0  ;;  %v807_v17 = vpop.eup %806 }
 0x15a   :  { %671 = vperm.xlu0 %766, %v663_v3   ;;  %v283_v3 = vcvt.f32.s32 %v1251_v54  ;;  %812 = vrcp.f32 %v504_v27  ;;  %v568_v54 = vsel %vm564_vm2, %v807_v17, 0.0 }
 0x15c   :  { %400 = vmin.xlane.f32.xlu1 %v399_v39  ;;  %v284_v2 = vshll.u32 %v283_v3, 16  ;;  %v809_v26 = vpop.eup %808  ;;  %v373_v3 = vcvt.f32.s32 %v1286_v35 }
 0x15d   :  { %v507_v48 = vpop.xlane.xlu0 %506  ;;  %v569_v21 = vsel %vm564_vm2, %v809_v26, 0.0 }
 0x15e   :  { %814 = vrcp.f32 %v507_v48 }
 0x160   :  { %v811_v27 = vpop.eup %810 }
 0x161   :  { %v510_v13 = vpop.xlane.xlu0 %509  ;;  %v570_v11 = vsel %vm564_vm2, %v811_v27, 0.0 }
 0x162   :  { %816 = vrcp.f32 %v510_v13 }
 0x164   :  { %v813_v48 = vpop.eup %812 }
 0x165   :  { %v513_v37 = vpop.xlane.xlu0 %512 }
 0x166   :  { %818 = vrcp.f32 %v513_v37 }
 0x168   :  { %v815_v13 = vpop.eup %814 }
 0x169   :  { %v516_v23 = vpop.xlane.xlu0 %515 }
 0x16a   :  { %820 = vrcp.f32 %v516_v23  ;;  %v374_v23 = vshll.u32 %v373_v3, 16 }
 0x16c   :  { %v817_v37 = vpop.eup %816 }
 0x16d   :  { %676 = vperm.xlu1 %767, %v664_v22  }
 0x170   :  { %v819_v17 = vpop.eup %818 }
 0x171   :  { %685 = vperm.xlu1 %767, %v681_v56   ;;  %v574_v35 = vsel %vm564_vm2, %v819_v17, 0.0  ;;  %v646_v17 = vld [vmem:[%s1473_s1] sm:$0x1] }
 0x175   :  { %690 = vperm.xlu1 %767, %v682_v44   ;;  %v269_v44 = vshll.u32 %v268_v36, 16 }
 0x199   :  { %430 = vmin.xlane.f32.xlu1 %v429_v20 }
 0x1b5   :  { %v206_v55 = vpop.xlane.xlu1 %205 }
 0x1b6   :  { %v207_v63 = vcvt.f32.s32 %v206_v55 }
 0x1b8   :  { %v210_v50 = vadd.s32 %v209_v57, %v207_v63  ;;  %v299_v57 = vshll.u32 %v298_v42, 16  ;;  %v821_v42 = vpop.eup %820 }
 0x1b9   :  { %v221_v51 = vpop.xlane.xlu1 %220 }
 0x1ba   :  { %v222_v19 = vcvt.f32.s32 %v221_v51  ;;  %v582_v1 = vcvt.s32.f32 %v210_v50  ;;  %v519_v50 = vpop.xlane.xlu0 %518 }
 0x1bb   :  { %822 = vrcp.f32 %v519_v50 }
 0x1bc   :  { %v225_v33 = vadd.s32 %v224_v10, %v222_v19  ;;  %v598_v5 = vsel %vm581_vm0, %v582_v1, %v565_v29  ;;  %v328_v1 = vcvt.f32.s32 %v1254_v12  ;;  %v571_v12 = vsel %vm564_vm2, %v813_v48, 0.0 }
 0x1bd   :  { %v236_v59 = vpop.xlane.xlu1 %235 }
 0x1be   :  { %v237_v6 = vcvt.f32.s32 %v236_v59  ;;  %v583_v8 = vcvt.s32.f32 %v225_v33  ;;  %v522_v29 = vpop.xlane.xlu0 %521  ;;  %v329_v9 = vshll.u32 %v328_v1, 16 }
 0x1bf   :  { %824 = vrcp.f32 %v522_v29 }
 0x1c0   :  { %v240_v15 = vadd.s32 %v239_v7, %v237_v6  ;;  %v599_v56 = vsel %vm581_vm0, %v583_v8, %v566_v47  ;;  %v343_v8 = vcvt.f32.s32 %v1278_v14  ;;  %v358_v47 = vcvt.f32.s32 %v1259_v46 }
 0x1c1   :  { %v251_v60 = vpop.xlane.xlu1 %250  ;;  %v572_v14 = vsel %vm564_vm2, %v815_v13, 0.0  ;;  %v573_v46 = vsel %vm564_vm2, %v817_v37, 0.0 }
 0x1c2   :  { %v252_v52 = vcvt.f32.s32 %v251_v60  ;;  %v584_v18 = vcvt.s32.f32 %v240_v15  ;;  %v525_v16 = vpop.xlane.xlu0 %524 }
 0x1c3   :  { %826 = vrcp.f32 %v525_v16 }
 0x1c4   :  { %v255_v39 = vadd.s32 %v254_v31, %v252_v52  ;;  %v600_v45 = vsel %vm581_vm0, %v584_v18, %v567_v43 }
 0x1c5   :  { %v266_v0 = vpop.xlane.xlu1 %265  ;;  %v823_v40 = vpop.eup %822 }
 0x1c6   :  { %v267_v22 = vcvt.f32.s32 %v266_v0  ;;  %v585_v49 = vcvt.s32.f32 %v255_v39 }
 0x1c8   :  { %v270_v20 = vadd.s32 %v269_v44, %v267_v22  ;;  %v601_v63 = vsel %vm581_vm0, %v585_v49, %v568_v54  ;;  %v359_v44 = vshll.u32 %v358_v47, 16 }
 0x1c9   :  { %v281_v58 = vpop.xlane.xlu1 %280 }
 0x1ca   :  { %v282_v38 = vcvt.f32.s32 %v281_v58  ;;  %v586_v51 = vcvt.s32.f32 %v270_v20 }
 0x1cc   :  { %614 = vxpose.xlu1.b32.start [1/16] (narrow) %v598_v5, 8  ;;  %v285_v24 = vadd.s32 %v284_v2, %v282_v38  ;;  %v602_v0 = vsel %vm581_vm0, %v586_v51, %v569_v21  ;;  %v388_v2 = vcvt.f32.s32 %v1266_v25  ;;  %v575_v25 = vsel %vm564_vm2, %v821_v42, 0.0 }
 0x1cd   :  { %v296_v34 = vpop.xlane.xlu1 %295 }
 0x1ce   :  { %v297_v59 = vcvt.f32.s32 %v296_v34  ;;  %v587_v19 = vcvt.s32.f32 %v285_v24  ;;  %v344_v34 = vshll.u32 %v343_v8, 16 }
 0x1d0   :  { %615 = vxpose.xlu1.b32.cont [2/16] (narrow) %v599_v56, 8  ;;  %v300_v10 = vadd.s32 %v299_v57, %v297_v59  ;;  %v603_v58 = vsel %vm581_vm0, %v587_v19, %v570_v11  ;;  %v403_v57 = vcvt.f32.s32 %v1294_v53  ;;  %v576_v53 = vsel %vm564_vm2, %v823_v40, 0.0 }
 0x1d1   :  { %v311_v32 = vpop.xlane.xlu1 %310 }
 0x1d2   :  { %v312_v62 = vcvt.f32.s32 %v311_v32  ;;  %v588_v6 = vcvt.s32.f32 %v300_v10  ;;  %v528_v32 = vpop.xlane.xlu0 %527  ;;  %v404_v10 = vshll.u32 %v403_v57, 16 }
 0x1d3   :  { %828 = vrcp.f32 %v528_v32 }
 0x1d4   :  { %616 = vxpose.xlu1.b32.cont [3/16] (narrow) %v600_v45, 8  ;;  %v315_v7 = vadd.s32 %v314_v4, %v312_v62  ;;  %v604_v31 = vsel %vm581_vm0, %v588_v6, %v571_v12  ;;  %v418_v62 = vcvt.f32.s32 %v1272_v28 }
 0x1d5   :  { %v326_v55 = vpop.xlane.xlu1 %325 }
 0x1d6   :  { %v327_v30 = vcvt.f32.s32 %v326_v55  ;;  %v589_v15 = vcvt.s32.f32 %v315_v7  ;;  %v531_v24 = vpop.xlane.xlu0 %530  ;;  %v419_v48 = vshll.u32 %v418_v62, 16 }
 0x1d7   :  { %830 = vrcp.f32 %v531_v24 }
 0x1d8   :  { %617 = vxpose.xlu1.b32.cont [4/16] (narrow) %v601_v63, 8  ;;  %v330_v52 = vadd.s32 %v329_v9, %v327_v30  ;;  %v605_v56 = vsel %vm581_vm0, %v589_v15, %v572_v14  ;;  %v389_v63 = vshll.u32 %v388_v2, 16 }
 0x1d9   :  { %v341_v60 = vpop.xlane.xlu1 %340 }
 0x1da   :  { %v342_v5 = vcvt.f32.s32 %v341_v60  ;;  %v590_v18 = vcvt.s32.f32 %v330_v52  ;;  %v416_v19 = vpop.xlane.xlu0 %415  ;;  %v833_v52 = vmov 0.0  }
 0x1db   :  { %v417_v4 = vcvt.f32.s32 %v416_v19  ;;  %91 = vst.msk [vmem:[%s1472_s4] sm:$0xff] %vm90_vm3, %v833_v52  ;;  %92 = vst.msk [vmem:[%s1472_s4 + $0x8] sm:$0xff] %vm90_vm3, %v833_v52 }
 0x1dc   :  { %618 = vxpose.xlu1.b32.cont [5/16] (narrow) %v602_v0, 8  ;;  %v345_v39 = vadd.s32 %v344_v34, %v342_v5  ;;  %v606_v45 = vsel %vm581_vm0, %v590_v18, %v573_v46  ;;  %v825_v0 = vpop.eup %824  ;;  %v433_v34 = vcvt.f32.s32 %v1311_v61  ;;  %93 = vst.msk [vmem:[%s1474_s5] sm:$0xff] %vm90_vm3, %v833_v52  ;;  %94 = vst.msk [vmem:[%s1474_s5 + $0x8] sm:$0xff] %vm90_vm3, %v833_v52 }
 0x1dd   :  { %v356_v33 = vpop.xlane.xlu1 %355  ;;  %v577_v6 = vsel %vm564_vm2, %v825_v0, 0.0  ;;  %v827_v7 = vpop.eup %826  ;;  %v420_v30 = vadd.s32 %v419_v48, %v417_v4  ;;  %95 = vst.msk [vmem:[%s1475_s6] sm:$0xff] %vm90_vm3, %v833_v52  ;;  %96 = vst.msk [vmem:[%s1475_s6 + $0x8] sm:$0xff] %vm90_vm3, %v833_v52 }
 0x1de   :  { %v357_v22 = vcvt.f32.s32 %v356_v33  ;;  %v591_v49 = vcvt.s32.f32 %v345_v39  ;;  %v578_v29 = vsel %vm564_vm2, %v827_v7, 0.0  ;;  %v829_v9 = vpop.eup %828  ;;  %v434_v16 = vshll.u32 %v433_v34, 16  ;;  %v672_v46 = vpop.permute.xlu0 %671 }
 0x1df   :  { %v596_v8 = vcvt.s32.f32 %v420_v30  ;;  %v579_v13 = vsel %vm564_vm2, %v829_v9, 0.0 }
 0x1e0   :  { %619 = vxpose.xlu1.b32.cont [6/16] (narrow) %v603_v58, 8  ;;  %v360_v20 = vadd.s32 %v359_v44, %v357_v22  ;;  %v607_v51 = vsel %vm581_vm0, %v591_v49, %v574_v35  ;;  %v1484_v44 = vlaneseq }
 0x1e1   :  { %v371_v36 = vpop.xlane.xlu1 %370  ;;  %v612_v15 = vsel %vm581_vm0, %v596_v8, %v579_v13  ;;  %v831_v37 = vpop.eup %830 }
 0x1e2   :  { %v372_v38 = vcvt.f32.s32 %v371_v36  ;;  %v592_v55 = vcvt.s32.f32 %v360_v20  ;;  %v580_v22 = vsel %vm564_vm2, %v831_v37, 0.0  ;;  %v650_v3 = vshrl.u32 %v1484_v44, 7 }
 0x1e3   :  { %v647_v20 = vcvt.s32.f32 %v646_v17  ;;  %v712_v40 = vld [vmem:[%s1474_s5] sm:$0xff] }
 0x1e4   :  { %620 = vxpose.xlu1.b32.cont [7/16] (narrow) %v604_v31, 8  ;;  %v375_v54 = vadd.s32 %v374_v23, %v372_v38  ;;  %v608_v27 = vsel %vm581_vm0, %v592_v55, %v575_v25  ;;  %v651_v32 = vsub.s32 0, %v650_v3  ;;  %v728_v2 = vsub.s32 1, %v650_v3  ;;  %v725_v0 = vld [vmem:[%s1475_s6 + $0x8] sm:$0xff] }
 0x1e5   :  { %v386_v43 = vpop.xlane.xlu1 %385 }
 0x1e6   :  { %v387_v26 = vcvt.f32.s32 %v386_v43  ;;  %v593_v60 = vcvt.s32.f32 %v375_v54 }
 0x1e8   :  { %621 = vxpose.xlu1.b32.cont [8/16] (narrow) %v605_v56, 8  ;;  %v390_v50 = vadd.s32 %v389_v63, %v387_v26  ;;  %v609_v11 = vsel %vm581_vm0, %v593_v60, %v576_v53  ;;  %v702_v63 = vld [vmem:[%s1472_s4 + $0x8] sm:$0xff] }
 0x1e9   :  { %v401_v59 = vpop.xlane.xlu1 %400 }
 0x1ea   :  { %v402_v21 = vcvt.f32.s32 %v401_v59  ;;  %v594_v1 = vcvt.s32.f32 %v390_v50 }
 0x1ec   :  { %622 = vxpose.xlu1.b32.cont [9/16] (narrow) %v606_v45, 8  ;;  %v405_v33 = vadd.s32 %v404_v10, %v402_v21  ;;  %v610_v28 = vsel %vm581_vm0, %v594_v1, %v577_v6  ;;  %v652_v45 = vrot.slane %v647_v20, %v651_v32  ;;  %v713_v21 = vld [vmem:[%s1474_s5 + $0x8] sm:$0xff]  ;;  %v724_v10 = vld [vmem:[%s1475_s6] sm:$0xff] }
 0x1ed   :  { %v677_v5 = vpop.permute.xlu1 %676 }
 0x1ee   :  { %v595_v58 = vcvt.s32.f32 %v405_v33 }
 0x1f0   :  { %623 = vxpose.xlu1.b32.cont [10/16] (narrow) %v607_v51, 8  ;;  %v611_v12 = vsel %vm581_vm0, %v595_v58, %v578_v29  ;;  %v701_v51 = vld [vmem:[%s1472_s4] sm:$0xff] }
 0x1f1   :  { %v686_v31 = vpop.permute.xlu1 %685 }
 0x1f4   :  { %624 = vxpose.xlu1.b32.cont [11/16] (narrow) %v608_v27, 8 }
 0x1f5   :  { %v691_v36 = vpop.permute.xlu1 %690 }
 0x1f8   :  { %625 = vxpose.xlu1.b32.cont [12/16] (narrow) %v609_v11, 8 }
 0x1fc   :  { %626 = vxpose.xlu1.b32.cont [13/16] (narrow) %v610_v28, 8 }
 0x200   :  { %627 = vxpose.xlu1.b32.cont [14/16] (narrow) %v611_v12, 8 }
 0x204   :  { %628 = vxpose.xlu1.b32.cont [15/16] (narrow) %v612_v15, 8 }
 0x226   :  { %v431_v47 = vpop.xlane.xlu1 %430 }
 0x227   :  { %v432_v14 = vcvt.f32.s32 %v431_v47 }
 0x229   :  { %v435_v18 = vadd.s32 %v434_v16, %v432_v14 }
 0x22b   :  { %v597_v39 = vcvt.s32.f32 %v435_v18 }
 0x22d   :  { %v613_v56 = vsel %vm581_vm0, %v597_v39, %v580_v22 }
 0x22e   :  { %629 = vxpose.xlu1.b32.end [16/16] (narrow) %v613_v56, 8 }
 0x272   :  { %v630_v43 = vpop.trf.xlu1 }
 0x273   :  { %v662_v61 = vsel %vm661_vm4, %v630_v43, -1.0  ;;  %vm654_vm11 = vcmp.eq.f32.partialorder %v630_v43, %v652_v45 }
 0x274   :  { %v668_v49 = vrot.slane %v662_v61, %v651_v32  ;;  %v761_v35 = vsel %vm654_vm11, 1.0, %v833_v52 }
 0x275   :  { %v729_v55 = vrot.slane %v761_v35, %v728_v2 }
 0x276   :  { %vm693_vm5 = vcmp.le.f32.partialorder %v668_v49, %v686_v31  ;;  %vm679_vm6 = vcmp.gt.f32.partialorder %v668_v49, %v672_v46  ;;  %vm680_vm7 = vcmp.gt.f32.partialorder %v668_v49, %v677_v5  ;;  %vm694_vm8 = vcmp.le.f32.partialorder %v668_v49, %v691_v36 }
 0x277   :  { %vm695_vm9 = vmand %vm679_vm6, %vm693_vm5 }
 0x278   :  { %v762_v38 = vsel %vm695_vm9, 1.0, %v833_v52  ;;  %vm696_vm10 = vmand %vm680_vm7, %vm694_vm8 }
 0x279   :  { %703 = vadd.xlane.f32.xlu0 %v762_v38  ;;  %v763_v41 = vsel %vm696_vm10, 1.0, %v833_v52  ;;  %v714_v23 = vmul.f32 %v762_v38, %v668_v49  ;;  %v730_v54 = vmul.f32 %v762_v38, %v729_v55 }
 0x27a   :  { %v715_v42 = vmul.f32 %v763_v41, %v668_v49  ;;  %v731_v26 = vmul.f32 %v763_v41, %v729_v55 }
 0x27d   :  { %705 = vadd.xlane.f32.xlu0 %v763_v41 }
 0x281   :  { %716 = vadd.xlane.f32.xlu0 %v714_v23 }
 0x285   :  { %718 = vadd.xlane.f32.xlu0 %v715_v42 }
 0x289   :  { %732 = vadd.xlane.f32.xlu0 %v730_v54 }
 0x28d   :  { %734 = vadd.xlane.f32.xlu0 %v731_v26 }
 0x306   :  { %v704_v24 = vpop.xlane.xlu0 %703 }
 0x307   :  { %v707_v59 = vadd.f32 %v704_v24, %v701_v51 }
 0x309   :  { %710 = vst.msk [vmem:[%s1472_s4] sm:$0xff] %vm90_vm3, %v707_v59 }
 0x30a   :  { %v706_v57 = vpop.xlane.xlu0 %705 }
 0x30b   :  { %v708_v25 = vadd.f32 %v706_v57, %v702_v63 }
 0x30d   :  { %711 = vst.msk [vmem:[%s1472_s4 + $0x8] sm:$0xff] %vm90_vm3, %v708_v25 }
 0x30e   :  { %v717_v60 = vpop.xlane.xlu0 %716 }
 0x30f   :  { %v720_v50 = vadd.f32 %v717_v60, %v712_v40 }
 0x311   :  { %722 = vst.msk [vmem:[%s1474_s5] sm:$0xff] %vm90_vm3, %v720_v50 }
 0x312   :  { %v719_v27 = vpop.xlane.xlu0 %718 }
 0x313   :  { %v721_v19 = vadd.f32 %v719_v27, %v713_v21 }
 0x315   :  { %723 = vst.msk [vmem:[%s1474_s5 + $0x8] sm:$0xff] %vm90_vm3, %v721_v19 }
 0x316   :  { %v733_v62 = vpop.xlane.xlu0 %732 }
 0x317   :  { %v736_v53 = vadd.f32 %v733_v62, %v724_v10 }
 0x319   :  { %738 = vst.msk [vmem:[%s1475_s6] sm:$0xff] %vm90_vm3, %v736_v53 }
 0x31a   :  { %v735_v4 = vpop.xlane.xlu0 %734 }
 0x31b   :  { %v737_v1 = vadd.f32 %v735_v4, %v725_v0 }
 0x31d   :  { %739 = vst.msk [vmem:[%s1475_s6 + $0x8] sm:$0xff] %vm90_vm3, %v737_v1 }

</bundles_post_ra>
